<compile_context>
chip_gen: v7x
topology: tpu7x:2x2x1
jax: 0.10.0
libtpu: 0.0.40
codegen_flags: <defaults>
</compile_context>

<pallas_src>
import jax
import jax.numpy as jnp
from jax.experimental import pallas as pl
from jax.experimental.pallas import tpu as pltpu


_LANE = 128
_TARGET_BLOCK_BYTES = 4 * 1024 * 1024  # ~4 MiB per x buffer; x2 double-buffered
                                        # stays under v5e 16 MiB scoped default
                                        # and far under v7x 64 MiB physical VMEM.


def _tiling(hw, c, itemsize, tile=None, outer=None):
    """Byte-targeted lane tiling of the flattened spatial axis.

    Returns (tile, outer, inner, hw_pad) with tile % 128 == 0 and
    hw_pad = tile * outer * inner >= hw (wrapper zero-pads; zeros are exact
    no-ops for the conv and the BN statistics).
    """
    hw128 = pl.cdiv(hw, _LANE) * _LANE
    forced = tile is not None
    if not forced:
        lanes = max(_LANE, (_TARGET_BLOCK_BYTES // (c * itemsize)) // _LANE * _LANE)
        tile = min(lanes, hw128)
    assert tile % _LANE == 0
    n_steps = pl.cdiv(hw128, tile)
    if outer is None:
        # Parallel HW split: keeps both v7x TensorCores busy when N is tiny.
        # Neutral on v5e/v6e (single TensorCore).
        outer = 2 if n_steps >= 2 else 1
    n_steps = pl.cdiv(n_steps, outer) * outer
    if not forced:
        # Re-balance so padding stays below one 128-lane vector per step.
        tile = pl.cdiv(hw128 // _LANE, n_steps) * _LANE
    inner = n_steps // outer
    hw_pad = tile * n_steps
    return tile, outer, inner, hw_pad


def conv1x1_bn(x, conv_w, gamma, beta, eps=1e-5, tile=None, outer=None):
    """x: (N, C, H, W) f32/bf16; conv_w: (1, C, 1, 1), no bias. Returns (N,1,H,W) f32."""
    N, C, H, W = x.shape
    HW = H * W
    itemsize = jnp.dtype(x.dtype).itemsize
    tile, outer, inner, hw_pad = _tiling(HW, C, itemsize, tile, outer)

    use_mxu = C >= 8  # MXU slot is otherwise idle in this memory-bound kernel.

    x3 = x.reshape(N, C, HW)  # free reshape; keep the native dtype (no f32 copy)
    if hw_pad != HW:
        x3 = jnp.pad(x3, ((0, 0), (0, 0), (0, hw_pad - HW)))  # zeros: no stat effect

    if use_mxu:
        w2d = conv_w.reshape(1, C).astype(x3.dtype)   # (1, C) row -> MXU matmul
    else:
        w2d = conv_w.reshape(C, 1).astype(x3.dtype)   # (C, 1) col -> VPU path

    def pass1_kernel(w_ref, x_ref, z_ref, stats_ref, sum_acc, sq_acc):
        ti = pl.program_id(2)

        @pl.when(ti == 0)
        def _init():
            sum_acc[...] = jnp.zeros_like(sum_acc)
            sq_acc[...] = jnp.zeros_like(sq_acc)

        if use_mxu:
            z = jnp.dot(w_ref[...], x_ref[...], preferred_element_type=jnp.float32)
        else:
            # Tiny-C sublane reduce; upcast in-kernel (v5e VPU has no bf16 ALU).
            z = jnp.sum(x_ref[...].astype(jnp.float32)
                        * w_ref[...].astype(jnp.float32),
                        axis=0, keepdims=True)
        z_ref[...] = z                               # lane-dense (1, tile) store

        # Lane-resident accumulation: pure VPU adds per step, no per-step XLU.
        sum_acc[...] += z
        sq_acc[...] += z * z

        @pl.when(ti == pl.num_programs(2) - 1)
        def _finalize():
            s = sum_acc[:, 0:_LANE]
            q = sq_acc[:, 0:_LANE]
            for j in range(1, tile // _LANE):        # static, finalize-only adds
                s = s + sum_acc[:, j * _LANE:(j + 1) * _LANE]
                q = q + sq_acc[:, j * _LANE:(j + 1) * _LANE]
            stats_ref[...] = jnp.concatenate([s, q], axis=0)

    vmem_need = (2 * C * tile * itemsize   # x, double buffered
                 + 2 * tile * 4            # z, double buffered
                 + 2 * 2 * _LANE * 4       # stats, double buffered
                 + 2 * tile * 4)           # sum/sq scratch accumulators
    vmem_limit = int(min(48 * 1024 * 1024,
                         max(2 * vmem_need + (4 << 20), 16 << 20)))

    z, stats = pl.pallas_call(
        pass1_kernel,
        out_shape=(
            jax.ShapeDtypeStruct((N, 1, hw_pad), jnp.float32),
            jax.ShapeDtypeStruct((N, outer, 2, _LANE), jnp.float32),
        ),
        grid=(N, outer, inner),
        in_specs=[
            pl.BlockSpec(w2d.shape, lambda n, to, ti: (0, 0)),                 # weight
            pl.BlockSpec((None, C, tile), lambda n, to, ti: (n, 0, to * inner + ti)),
        ],
        out_specs=(
            pl.BlockSpec((None, 1, tile), lambda n, to, ti: (n, 0, to * inner + ti)),
            pl.BlockSpec((None, None, 2, _LANE), lambda n, to, ti: (n, to, 0, 0)),
        ),
        scratch_shapes=[
            pltpu.VMEM((1, tile), jnp.float32),   # running per-lane sum(z)
            pltpu.VMEM((1, tile), jnp.float32),   # running per-lane sum(z^2)
        ],
        compiler_params=pltpu.CompilerParams(
            dimension_semantics=("parallel", "parallel", "arbitrary"),
            vmem_limit_bytes=vmem_limit),
        cost_estimate=pl.CostEstimate(
            flops=2 * N * C * hw_pad + 3 * N * hw_pad,
            transcendentals=0,
            bytes_accessed=itemsize * N * C * hw_pad + 4 * N * hw_pad
                           + 4 * N * outer * 2 * _LANE),
    )(w2d, x3)

    # Global batch statistics (biased variance, training-mode BatchNorm2d(1)).
    # Padded lanes contribute exact zeros; divide by the true element count.
    # NOTE: E[z^2]-E[z]^2 in f32 can lose precision for huge N*HW with large
    # |mean|; acceptable at BN-scale activations (matches the f32 reference).
    cnt = jnp.float32(N * HW)
    total = jnp.sum(stats[:, :, 0, :])
    total_sq = jnp.sum(stats[:, :, 1, :])
    mean = total / cnt
    var = jnp.maximum(total_sq / cnt - mean * mean, 0.0)
    inv_std = jax.lax.rsqrt(var + jnp.float32(eps))

    # Folded affine out = a*z + b applied in plain JAX (fuses into the consumer;
    # a dedicated (1, tile)-block Pallas pass was pure per-step overhead).
    g = jnp.asarray(gamma, jnp.float32)
    a = g * inv_std
    b = jnp.asarray(beta, jnp.float32) - g * mean * inv_std
    out = a * z[:, :, :HW] + b
    return out.reshape(N, 1, H, W)


def _reference(x, conv_w, gamma, beta, eps=1e-5):
    # Pure-JAX reference: 1x1 conv (C->1, no bias) + BN(1) with batch stats.
    x = x.astype(jnp.float32)
    w = conv_w.astype(jnp.float32).reshape(-1)              # (C,)
    z = jnp.einsum("nchw,c->nhw", x, w)[:, None, :, :]      # (N,1,H,W)
    mean = jnp.mean(z)
    var = jnp.mean((z - mean) ** 2)
    return gamma * (z - mean) * jax.lax.rsqrt(var + eps) + beta


if __name__ == "__main__":
    key = jax.random.PRNGKey(0)
    keys = jax.random.split(key, 12)

    def check(out, ref, tol):
        assert out.shape == ref.shape
        err = float(jnp.max(jnp.abs(out - ref)))
        assert err < tol, f"max abs err {err} >= {tol}"

    gamma = 1.0 + 0.1 * jax.random.normal(keys[0], (), dtype=jnp.float32)
    beta = 0.1 * jax.random.normal(keys[1], (), dtype=jnp.float32)

    # Test 1: tiny C (VPU channel-reduce path), single HW tile per image.
    N, C, H, W = 2, 4, 16, 16
    x = jax.random.normal(keys[2], (N, C, H, W), dtype=jnp.float32)
    conv_w = jax.random.normal(keys[3], (1, C, 1, 1), dtype=jnp.float32) * 0.5
    out = jax.block_until_ready(conv1x1_bn(x, conv_w, gamma, beta))
    check(out, _reference(x, conv_w, gamma, beta), 2e-4)

    # Test 2: wide C (MXU) with forced 128-lane tiles -> 2 parallel HW chunks,
    # exercising the per-chunk partial-stats path summed in XLA.
    N2, C2 = 2, 128
    x2 = jax.random.normal(keys[4], (N2, C2, H, W), dtype=jnp.float32)
    conv_w2 = jax.random.normal(keys[5], (1, C2, 1, 1), dtype=jnp.float32) * 0.1
    out2 = jax.block_until_ready(conv1x1_bn(x2, conv_w2, gamma, beta, tile=128))
    check(out2, _reference(x2, conv_w2, gamma, beta), 5e-4)

    # Test 3: non-128-divisible spatial size -> zero padding path.
    N3, C3, H3, W3 = 3, 16, 10, 12
    x3 = jax.random.normal(keys[6], (N3, C3, H3, W3), dtype=jnp.float32)
    conv_w3 = jax.random.normal(keys[7], (1, C3, 1, 1), dtype=jnp.float32) * 0.3
    out3 = jax.block_until_ready(conv1x1_bn(x3, conv_w3, gamma, beta))
    check(out3, _reference(x3, conv_w3, gamma, beta), 1e-3)

    # Test 4: many sequential inner tiles per chunk (cross-tile accumulator).
    N4, C4, H4, W4 = 1, 32, 32, 32
    x4 = jax.random.normal(keys[8], (N4, C4, H4, W4), dtype=jnp.float32)
    conv_w4 = jax.random.normal(keys[9], (1, C4, 1, 1), dtype=jnp.float32) * 0.2
    out4 = jax.block_until_ready(conv1x1_bn(x4, conv_w4, gamma, beta, tile=128, outer=1))
    check(out4, _reference(x4, conv_w4, gamma, beta), 1e-3)

    # Test 5: bf16 activations/weights consumed natively by the MXU path.
    N5, C5 = 2, 64
    x5 = jax.random.normal(keys[10], (N5, C5, H, W), dtype=jnp.float32).astype(jnp.bfloat16)
    conv_w5 = (jax.random.normal(keys[11], (1, C5, 1, 1), dtype=jnp.float32) * 0.1
               ).astype(jnp.bfloat16)
    out5 = jax.block_until_ready(conv1x1_bn(x5, conv_w5, gamma, beta, tile=128))
    check(out5, _reference(x5, conv_w5, gamma, beta), 5e-3)

    print("KERNEL_OK")
</pallas_src>

<mosaic_0001>
module attributes {stable_mosaic.version = 11 : i64} {
  func.func @pass1_kernel(%arg0: i32, %arg1: i32, %arg2: i32, %arg3: memref<4x1xf32, #tpu.memory_space<vmem>>, %arg4: memref<1x4x256xf32, #tpu.memory_space<vmem>>, %arg5: memref<1x1x256xf32, #tpu.memory_space<vmem>>, %arg6: memref<1x1x2x128xf32, #tpu.memory_space<vmem>>, %arg7: memref<1x256xf32, #tpu.memory_space<vmem>>, %arg8: memref<1x256xf32, #tpu.memory_space<vmem>>) attributes {dimension_semantics = [#tpu.dimension_semantics<parallel>, #tpu.dimension_semantics<parallel>, #tpu.dimension_semantics<arbitrary>], iteration_bounds = array<i64: 2, 1, 1>, scalar_prefetch = 0 : i64, scratch_operands = 2 : i64, tpu.core_type = #tpu.core_type<tc>, window_params = [{pipeline_mode = #tpu.pipeline_mode<synchronous>, transform_indices = @transform_0, window_bounds = array<i64: 4, 1>}, {transform_indices = @transform_1, window_bounds = array<i64: 1, 4, 256>}, {transform_indices = @transform_2, window_bounds = array<i64: 1, 1, 256>}, {transform_indices = @transform_3, window_bounds = array<i64: 1, 1, 2, 128>}]} {
    %c0_i32 = arith.constant 0 : i32
    %0 = arith.cmpi eq, %arg2, %c0_i32 : i32
    %1 = arith.extui %0 : i1 to i32
    %c0_i32_0 = arith.constant 0 : i32
    %2 = arith.cmpi ne, %1, %c0_i32_0 : i32
    scf.if %2 {
      %cst_18 = arith.constant 0.000000e+00 : f32
      %23 = vector.broadcast %cst_18 : f32 to vector<1x256xf32>
      %c0_19 = arith.constant 0 : index
      %c0_20 = arith.constant 0 : index
      %24 = vector.load %arg7[%c0_19, %c0_20] : memref<1x256xf32, #tpu.memory_space<vmem>>, vector<1x256xf32>
      tpu.vector_store %arg7[%c0_19, %c0_20], %23 {strides = array<i32>} : memref<1x256xf32, #tpu.memory_space<vmem>>, vector<1x256xf32>,
      %cst_21 = arith.constant 0.000000e+00 : f32
      %25 = vector.broadcast %cst_21 : f32 to vector<1x256xf32>
      %c0_22 = arith.constant 0 : index
      %c0_23 = arith.constant 0 : index
      %26 = vector.load %arg8[%c0_22, %c0_23] : memref<1x256xf32, #tpu.memory_space<vmem>>, vector<1x256xf32>
      tpu.vector_store %arg8[%c0_22, %c0_23], %25 {strides = array<i32>} : memref<1x256xf32, #tpu.memory_space<vmem>>, vector<1x256xf32>,
    } else {
    }
    %c0 = arith.constant 0 : index
    %c0_1 = arith.constant 0 : index
    %c0_2 = arith.constant 0 : index
    %3 = vector.load %arg4[%c0, %c0_1, %c0_2] : memref<1x4x256xf32, #tpu.memory_space<vmem>>, vector<1x4x256xf32>
    %4 = vector.shape_cast %3 : vector<1x4x256xf32> to vector<4x256xf32>
    %c0_3 = arith.constant 0 : index
    %c0_4 = arith.constant 0 : index
    %5 = vector.load %arg3[%c0_3, %c0_4] : memref<4x1xf32, #tpu.memory_space<vmem>>, vector<4x1xf32>
    %6 = vector.broadcast %5 : vector<4x1xf32> to vector<4x256xf32>
    %7 = arith.mulf %4, %6 : vector<4x256xf32>
    %cst = arith.constant dense<0.000000e+00> : vector<256xf32>
    %8 = vector.multi_reduction <add>, %7, %cst [0] : vector<4x256xf32> to vector<256xf32>
    %9 = vector.shape_cast %8 : vector<256xf32> to vector<1x256xf32>
    %c0_5 = arith.constant 0 : index
    %c0_6 = arith.constant 0 : index
    %c0_7 = arith.constant 0 : index
    %10 = vector.load %arg5[%c0_5, %c0_6, %c0_7] : memref<1x1x256xf32, #tpu.memory_space<vmem>>, vector<1x1x256xf32>
    %11 = vector.shape_cast %10 : vector<1x1x256xf32> to vector<1x256xf32>
    %12 = vector.shape_cast %9 : vector<1x256xf32> to vector<1x1x256xf32>
    tpu.vector_store %arg5[%c0_5, %c0_6, %c0_7], %12 {strides = array<i32>} : memref<1x1x256xf32, #tpu.memory_space<vmem>>, vector<1x1x256xf32>,
    %c0_8 = arith.constant 0 : index
    %c0_9 = arith.constant 0 : index
    %13 = vector.load %arg7[%c0_8, %c0_9] : memref<1x256xf32, #tpu.memory_space<vmem>>, vector<1x256xf32>
    %14 = arith.addf %13, %9 : vector<1x256xf32>
    %c0_10 = arith.constant 0 : index
    %c0_11 = arith.constant 0 : index
    %15 = vector.load %arg7[%c0_10, %c0_11] : memref<1x256xf32, #tpu.memory_space<vmem>>, vector<1x256xf32>
    tpu.vector_store %arg7[%c0_10, %c0_11], %14 {strides = array<i32>} : memref<1x256xf32, #tpu.memory_space<vmem>>, vector<1x256xf32>,
    %c0_12 = arith.constant 0 : index
    %c0_13 = arith.constant 0 : index
    %16 = vector.load %arg8[%c0_12, %c0_13] : memref<1x256xf32, #tpu.memory_space<vmem>>, vector<1x256xf32>
    %17 = arith.mulf %9, %9 : vector<1x256xf32>
    %18 = arith.addf %16, %17 : vector<1x256xf32>
    %c0_14 = arith.constant 0 : index
    %c0_15 = arith.constant 0 : index
    %19 = vector.load %arg8[%c0_14, %c0_15] : memref<1x256xf32, #tpu.memory_space<vmem>>, vector<1x256xf32>
    tpu.vector_store %arg8[%c0_14, %c0_15], %18 {strides = array<i32>} : memref<1x256xf32, #tpu.memory_space<vmem>>, vector<1x256xf32>,
    %c0_i32_16 = arith.constant 0 : i32
    %20 = arith.cmpi eq, %arg2, %c0_i32_16 : i32
    %21 = arith.extui %20 : i1 to i32
    %c0_i32_17 = arith.constant 0 : i32
    %22 = arith.cmpi ne, %21, %c0_i32_17 : i32
    scf.if %22 {
      %c0_18 = arith.constant 0 : index
      %c0_19 = arith.constant 0 : index
      %23 = vector.load %arg7[%c0_18, %c0_19] : memref<1x256xf32, #tpu.memory_space<vmem>>, vector<1x128xf32>
      %c0_20 = arith.constant 0 : index
      %c0_21 = arith.constant 0 : index
      %24 = vector.load %arg8[%c0_20, %c0_21] : memref<1x256xf32, #tpu.memory_space<vmem>>, vector<1x128xf32>
      %c0_22 = arith.constant 0 : index
      %c128 = arith.constant 128 : index
      %25 = vector.load %arg7[%c0_22, %c128] : memref<1x256xf32, #tpu.memory_space<vmem>>, vector<1x128xf32>
      %26 = arith.addf %23, %25 : vector<1x128xf32>
      %c0_23 = arith.constant 0 : index
      %c128_24 = arith.constant 128 : index
      %27 = vector.load %arg8[%c0_23, %c128_24] : memref<1x256xf32, #tpu.memory_space<vmem>>, vector<1x128xf32>
      %28 = arith.addf %24, %27 : vector<1x128xf32>
      %29 = tpu.concatenate %26, %28 in 0 : vector<1x128xf32>, vector<1x128xf32> -> vector<2x128xf32>
      %c0_25 = arith.constant 0 : index
      %c0_26 = arith.constant 0 : index
      %c0_27 = arith.constant 0 : index
      %c0_28 = arith.constant 0 : index
      %30 = vector.load %arg6[%c0_25, %c0_26, %c0_27, %c0_28] : memref<1x1x2x128xf32, #tpu.memory_space<vmem>>, vector<1x1x2x128xf32>
      %31 = vector.shape_cast %30 : vector<1x1x2x128xf32> to vector<2x128xf32>
      %32 = vector.shape_cast %29 : vector<2x128xf32> to vector<1x1x2x128xf32>
      tpu.vector_store %arg6[%c0_25, %c0_26, %c0_27, %c0_28], %32 {strides = array<i32>} : memref<1x1x2x128xf32, #tpu.memory_space<vmem>>, vector<1x1x2x128xf32>,
    } else {
    }
    return
  }
  func.func @transform_0(%arg0: i32, %arg1: i32, %arg2: i32) -> (i32, i32) {
    %c0_i32 = arith.constant 0 : i32
    %c0_i32_0 = arith.constant 0 : i32
    %c0_i32_1 = arith.constant 0 : i32
    return %c0_i32, %c0_i32_0 : i32, i32
  }
  func.func @transform_1(%arg0: i32, %arg1: i32, %arg2: i32) -> (i32, i32, i32) {
    %c1_i32 = arith.constant 1 : i32
    %0 = arith.muli %arg1, %c1_i32 : i32
    %1 = arith.addi %0, %arg2 : i32
    %c0_i32 = arith.constant 0 : i32
    %c0_i32_0 = arith.constant 0 : i32
    return %arg0, %c0_i32, %1 : i32, i32, i32
  }
  func.func @transform_2(%arg0: i32, %arg1: i32, %arg2: i32) -> (i32, i32, i32) {
    %c1_i32 = arith.constant 1 : i32
    %0 = arith.muli %arg1, %c1_i32 : i32
    %1 = arith.addi %0, %arg2 : i32
    %c0_i32 = arith.constant 0 : i32
    %c0_i32_0 = arith.constant 0 : i32
    return %arg0, %c0_i32, %1 : i32, i32, i32
  }
  func.func @transform_3(%arg0: i32, %arg1: i32, %arg2: i32) -> (i32, i32, i32, i32) {
    %c0_i32 = arith.constant 0 : i32
    %c0_i32_0 = arith.constant 0 : i32
    %c0_i32_1 = arith.constant 0 : i32
    return %arg0, %arg1, %c0_i32, %c0_i32_0 : i32, i32, i32, i32
  }
}

</mosaic_0001>

<bundles_post_ra>
// kernel: tpu_custom_call.1
= control target key start
LH: loop header
LB: loop body
LE: loop exit
PB: predicated region body
PF: predicated region fallthrough
CT: control target
= control target key end

     0   :  { %9 = vsyncpa [#allocation5], 0  ;;  %s1000_s0 = inlined_call_operand.vmem [shape: f32[4,1], index: 0, kind: input, shape index: {}]   ;;  %s1001_s1 = inlined_call_operand.hbm [shape: f32[2,4,256], index: 1, kind: input, shape index: {}]   ;;  %s1002_s2 = inlined_call_operand.hbm [shape: f32[2,1,256], index: 2, kind: output, shape index: {0}]   ;;  %s1003_s3 = inlined_call_operand.hbm [shape: f32[2,1,2,128], index: 3, kind: output, shape index: {1}]  }
   0x1   :  { %11 = vsyncpa [#allocation5 + $0x1], 0 }
   0x2   :  { %12 = vsyncpa [#allocation6], 0 }
   0x3   :  { %14 = vsyncpa [#allocation6 + $0x1], 0 }
   0x4   :  { %15 = vsyncpa [#allocation9], 0 }
   0x5   :  { %17 = vsyncpa [#allocation9 + $0x1], 0  ;;  %s768_s12 = smov 0   ;;  %s770_s13 = smov 0  }
   0x6   :  { %s772_s14 = smov 0   ;;  %s774_s15 = smov 0  }
   0x7   :  { %s776_s16 = smov 0   ;;  %s778_s17 = smov 0  }
   0x8 LB: > { %s503_s18 = sadd.s32 4294967295, %s739_s17   ;;  %s504_s19 = sadd.s32 4294967294, %s739_s17   ;;  %s739_s17 = sphi %s778_s17, %s23_s17   ;;  %s735_s16 = sphi %s776_s16, %s1021_s16   ;;  %s731_s15 = sphi %s774_s15, %s1020_s15   ;;  %s727_s14 = sphi %s772_s14, %s1019_s14   ;;  %s723_s13 = sphi %s770_s13, %s1018_s13   ;;  %s719_s12 = sphi %s768_s12, %s1017_s12  }
   0x9   : > { %s42_s20 = sadd.s32 1, %s735_s16  ;;  %s74_s21 = sadd.s32 1, %s727_s14 }
   0xa   : > { %p44_p0 = scmp.ge.s32.totalorder %s42_s20, 2  ;;  %p81_p1 = scmp.ne.s32.totalorder %s727_s14, %s723_s13 }
   0xb   : > { %p82_p2 = scmp.eq.s32.totalorder %s739_s17, 0  ;;  %p87_p3 = scmp.ne.s32.totalorder %s723_s13, %s719_s12 }
   0xc   : > { %s1023_s20 = smov (%p44_p0, %s42_s20), 0  ;;  %p88_p5 = scmp.eq.s32.totalorder %s503_s18, 0 }
   0xd   : > { %p809_p4 = por %p82_p2, %p81_p1  ;;  %s69_s23 = ssub.s32 %s735_s16, %s1023_s20 }
   0xe   : > { %p115_p6 = scmp.eq.s32.totalorder %s503_s18, 1  ;;  %p72_p7 = scmp.eq.s32.totalorder %s69_s23, 0 }
   0xf   : > { %p815_p8 = por %p88_p5, %p87_p3  ;;  %p121_p10 = scmp.eq.s32.totalorder %s504_s19, 1 }
  0x10   : > { %p819_p9 = por %p115_p6, %p81_p1  ;;  %p540_p13 = scmp.lt.s32.totalorder %s739_s17, 2 }
  0x11   : > { %s824_s26 = scalar_select %p72_p7, %s727_s14, %s74_s21  }
  0x12   : > { %s1007_s25 = scalar_select %p819_p9, 1, 0 }
  0x13   : > { %p826_p11 = por %p121_p10, %p87_p3  ;;  %s172_s28 = sand.u32 1, %s727_s14  }
  0x14   : > { %s507_s29 = sshll.u32 %s172_s28, 3  ;;  %s521_s30 = sshll.u32 %s735_s16, 7 }
  0x15   : > { %s1008_s27 = scalar_select %p826_p11, 1, 0 }
  0x16   : > { %s837_s6 = scalar_lea.hbm %s1001_s1, %s521_s30  ;;  %s176_s7 = scalar_lea.vmem [#allocation4], %s507_s29 }
  0x17   : > { %s187_s8 = sshll.u32 %s176_s7, 4  ;;  %p843_p0 = pnand %p540_p13, %p809_p4  ;;  %s839_s8 = int_to_ptr.vmem [resolvable:$true] %s187_s8 }
  0x18   : > { %s173_s10 = scalar_lea.sflag [#allocation5], %s172_s28  ;;  %s595_s11 = scalar_lea.hbm %s837_s6, 128 }
  0x19   : > { %p596_p3 = scmp.ne.s32.totalorder %s837_s6, %s595_s11  ;;  %p597_p5 = pneg %p843_p0 }
  0x1a   : > { %s600_s21 = scalar_lea.hbm %s1001_s1, 256  ;;  %p601_p4 = scmp.lt.u32.totalorder %s837_s6, %s1001_s1 }
  0x1b   : > { %p598_p6 = pnand %p597_p5, %p596_p3  ;;  %p602_p10 = scmp.lt.u32.totalorder %s600_s21, %s595_s11 }
  0x1c   : > { %p604_p12 = scmp.lt.u32.totalorder %s595_s11, %s837_s6 }
  0x1d   : > { %p599_p7 = pneg %p598_p6  ;;  %p603_p13 = por %p602_p10, %p601_p4 }
  0x1f   : > { %p605_p1 = por %p604_p12, %p603_p13 }
  0x21   : > { %p606_p2 = pnand %p605_p1, %p599_p7 }
  0x23   : > { %609 = shalt.err (!%p606_p2)
}
  0x24   : > { %s610_s28 = scalar_lea.vmem %s839_s8, 128  ;;  %s741_s29 = smov [#allocation4]  }
  0x25   : > { %p611_p3 = scmp.ne.s32.totalorder %s839_s8, %s610_s28  ;;  %s615_s30 = sshll.u32 %s741_s29, 4  ;;  %s616_s30 = int_to_ptr.vmem [resolvable:$false] %s615_s30 }
  0x26   : > { %s617_s4 = scalar_lea.vmem %s616_s30, 256  ;;  %p618_p9 = scmp.lt.s32.totalorder %s839_s8, %s616_s30 }
  0x27   : > { %p613_p6 = pnand %p611_p3, %p597_p5  ;;  %p619_p4 = scmp.lt.s32.totalorder %s617_s4, %s610_s28 }
  0x29   : > { %p614_p11 = pneg %p613_p6  ;;  %p620_p10 = por %p619_p4, %p618_p9 }
  0x2b   : > { %p621_p12 = pnand %p620_p10, %p614_p11 }
  0x2d   : > { %624 = shalt.err (!%p621_p12)
}
  0x2e   : > { %532 = dma.hbm_to_vmem [thread:$0]  (!%p843_p0), %s837_s6, 128, %s839_s8, %s173_s10  }
  0x2f   : > { %p1010_p1 = scmp.lt.s32.totalorder %s739_s17, 3  ;;  %p1011_p2 = scmp.ge.s32.totalorder %s739_s17, 1 }
  0x31   : > { %p193_p5 = pnand %p1011_p2, %p1010_p1 }
  0x32   : > { %s879_s5 = sand.u32 (!%p193_p5), 1, %s723_s13  }
  0x33   : > { %196 = sbr.rel (%p193_p5) target bundleno = 256 (0x100), region = 28  ;;  %s511_s7 = sshll.u32 (!%p193_p5), %s879_s5, 3 }
  0x34   : > { %s199_s11 = scalar_lea.sflag (!%p193_p5), [#allocation5], %s879_s5  ;;  %s202_s18 = scalar_lea.vmem (!%p193_p5), [#allocation4], %s511_s7 }
  0x3a   : > { %706 = dma.done.wait (%p815_p8), %s199_s11, 128  }
  0x3b   : > { %708 = vsyncadd (%p815_p8), %s199_s11, 4294967168  ;;  %v238_v0 = vlaneseq  ;;  %v742_v1 = vmov 0   ;;  %v743_v3 = vmov 0.0   ;;  %v245_v4 = vld [vmem:[%s1000_s0] sm:$0xf]  ;;  %v244_v11 = vld [vmem:[%s202_s18] sm:$0xff] }
  0x3c   : > { %594 = vset.pattern.permute.xlu0 %v742_v1  ;;  %v744_v5 = vmov 839922192   ;;  %vm262_vm1 = vcmask 1043456   ;;  %v745_v20 = vmov 1966171168   ;;  %s512_s24 = sshll.u32 %s879_s5, 1 }
  0x3d   : > { %vm887_vm0 = vcmp.lt.s32.totalorder %v238_v0, 256  ;;  %248 = vperm.xlu0 %594, %v245_v4   ;;  %v251_v6 = vunpack.c.l.s4 %v744_v5  ;;  %v898_v8 = vshrl.u32 %v238_v0, 7  ;;  %v281_v21 = vunpack.c.l.s4 %v745_v20  ;;  %s522_s9 = sshll.u32 %s731_s15, 5  ;;  %s222_s10 = scalar_lea.vmem [#allocation7], %s512_s24 }
  0x3e   : > { %242 = vst.msk [vmem:[#allocation2] sm:$0x3] %vm887_vm0, %v743_v3  ;;  %243 = vst.msk [vmem:[#allocation3] sm:$0x3] %vm887_vm0, %v743_v3  ;;  %s367_s19 = sshll.u32 %s222_s10, 4  ;;  %s911_s23 = scalar_lea.hbm %s1002_s2, %s522_s9  ;;  %s913_s19 = int_to_ptr.vmem [resolvable:$true] %s367_s19 }
  0x3f   : > { %v252_v7 = vunpack.c.0.s8 %v251_v6  ;;  %v282_v26 = vunpack.c.0.s8 %v281_v21  ;;  %s345_s28 = scalar_lea.sflag [#allocation6], %s879_s5  ;;  %s625_s29 = scalar_lea.vmem %s913_s19, 32 }
  0x40   : > { %p626_p8 = scmp.ne.s32.totalorder %s913_s19, %s625_s29  ;;  %p1014_p9 = scmp.ne.s32.totalorder %s1007_s25, 0 }
  0x41   : > { %v255_v9 = vsub.s32 %v252_v7, %v898_v8  ;;  %v285_v31 = vsub.s32 %v282_v26, %v898_v8  ;;  %s746_s30 = smov [#allocation7]  }
  0x42   : > { %p627_p11 = pnand %p626_p8, %p1014_p9  ;;  %s629_s4 = sshll.u32 %s746_s30, 4  ;;  %s630_s4 = int_to_ptr.vmem [resolvable:$false] %s629_s4 }
  0x43   : > { %s631_s7 = scalar_lea.vmem %s630_s4, 64  ;;  %p632_p7 = scmp.lt.s32.totalorder %s913_s19, %s630_s4 }
  0x44   : > { %p628_p0 = pneg %p627_p11  ;;  %p633_p13 = scmp.lt.s32.totalorder %s631_s7, %s625_s29 }
  0x45   : > { %v300_v38 = vld [vmem:[#allocation2] sm:$0x3]  ;;  %v303_v41 = vld [vmem:[#allocation3] sm:$0x3] }
  0x46   : > { %p634_p3 = por %p633_p13, %p632_p7 }
  0x48   : > { %p635_p6 = pnand %p634_p3, %p628_p0 }
  0xbc   : > { %v249_v10 = vpop.permute.xlu0 %248 }
  0xbd   : > { %v256_v12 = vrot.slane %v249_v10, %v255_v9 }
  0xbf   : > { %v258_v13 = vmul.f32 %v256_v12, %v244_v11 }
  0xc1   : > { %v260_v14 = vcombine.high %v258_v13, %v258_v13  ;;  %v263_v15 = vsel %vm262_vm1, %v258_v13, 0.0 }
  0xc2   : > { %v264_v16 = vrot.slane %v263_v15, 4 }
  0xc3   : > { %v270_v17 = vsel %vm262_vm1, %v260_v14, 0.0 }
  0xc4   : > { %v265_v18 = vadd.f32 %v264_v16, %v263_v15  ;;  %v271_v19 = vrot.slane %v270_v17, 4 }
  0xc6   : > { %v266_v22 = vrot.slane %v265_v18, 2  ;;  %v272_v23 = vadd.f32 %v271_v19, %v270_v17 }
  0xc8   : > { %v267_v24 = vadd.f32 %v266_v22, %v265_v18  ;;  %v273_v25 = vrot.slane %v272_v23, 2 }
  0xca   : > { %v268_v27 = vrot.slane %v267_v24, 1  ;;  %v274_v28 = vadd.f32 %v273_v25, %v272_v23 }
  0xcc   : > { %v269_v29 = vadd.f32 %v268_v27, %v267_v24  ;;  %v275_v30 = vrot.slane %v274_v28, 1 }
  0xce   : > { %v276_v32 = vadd.f32 %v275_v30, %v274_v28  ;;  %v304_v34 = vmul.f32 %v269_v29, %v269_v29 }
  0xd0   : > { %v279_v33 = vcombine.low %v269_v29, %v276_v32  ;;  %v305_v35 = vmul.f32 %v276_v32, %v276_v32 }
  0xd2   : > { %v286_v36 = vrot.slane %v279_v33, %v285_v31  ;;  %v308_v37 = vcombine.low %v304_v34, %v305_v35 }
  0xd4   : > { %v315_v39 = vrot.slane %v308_v37, %v285_v31  ;;  %v293_v40 = vrot.slane %v286_v36, %v285_v31 }
  0xd6   : > { %v322_v42 = vrot.slane %v315_v39, %v285_v31  ;;  %299 = vst.msk [vmem:[%s222_s10] sm:$0x3] %vm887_vm0, %v293_v40  ;;  %v301_v43 = vadd.f32 %v300_v38, %v293_v40 }
  0xd7   : > { %638 = shalt.err (!%p635_p6)
}
  0xd8   : > { %s639_s11 = scalar_lea.hbm %s911_s23, 32  ;;  %s643_s8 = scalar_lea.hbm %s1002_s2, 64 }
  0xd9   : > { %p640_p4 = scmp.ne.s32.totalorder %s911_s23, %s639_s11  ;;  %p644_p1 = scmp.lt.u32.totalorder %s911_s23, %s1002_s2 }
  0xda   : > { %p645_p2 = scmp.lt.u32.totalorder %s643_s8, %s639_s11  ;;  %p647_p8 = scmp.lt.u32.totalorder %s639_s11, %s911_s23 }
  0xdb   : > { %p641_p10 = pnand %p640_p4, %p1014_p9 }
  0xdc   : > { %p646_p5 = por %p645_p2, %p644_p1 }
  0xdd   : > { %p642_p12 = pneg %p641_p10 }
  0xde   : > { %p648_p11 = por %p647_p8, %p646_p5 }
  0xe0   : > { %p649_p0 = pnand %p648_p11, %p642_p12 }
  0xe2   : > { %652 = shalt.err (!%p649_p0)
}
  0xe3   : > { %525 = dma.vmem_to_hbm [thread:$0]  (%p1014_p9), %s913_s19, 32, %s911_s23, %s345_s28   ;;  %v324_v44 = vadd.f32 %v322_v42, %v303_v41  ;;  %302 = vst.msk [vmem:[#allocation2] sm:$0x3] %vm887_vm0, %v301_v43  ;;  %v338_v45 = vsub.s32 0, %v898_v8  ;;  %vm341_vm2 = vcmask 1040384  }
  0xe4   : > { %s229_s22 = scalar_lea.vmem [#allocation8], %s512_s24  ;;  %s951_s28 = scalar_lea.hbm %s1003_s3, %s522_s9 }
  0xe5   : > { %325 = vst.msk [vmem:[#allocation3] sm:$0x3] %vm887_vm0, %v324_v44  ;;  %s381_s29 = sshll.u32 %s229_s22, 4  ;;  %s350_s30 = scalar_lea.sflag [#allocation9], %s879_s5  ;;  %s953_s29 = int_to_ptr.vmem [resolvable:$true] %s381_s29 }
  0xe6   : > { %s653_s4 = scalar_lea.vmem %s953_s29, 32  ;;  %s747_s24 = smov [#allocation8]  }
  0xe7   : > { %p654_p7 = scmp.ne.s32.totalorder %s953_s29, %s653_s4  ;;  %s657_s15 = sshll.u32 %s747_s24, 4  ;;  %s658_s15 = int_to_ptr.vmem [resolvable:$false] %s657_s15 }
  0xe8   : > { %s659_s7 = scalar_lea.vmem %s658_s15, 64  ;;  %p660_p6 = scmp.lt.s32.totalorder %s953_s29, %s658_s15 }
  0xe9   : > { %p655_p13 = pnand %p654_p7, %p1014_p9  ;;  %p661_p4 = scmp.lt.s32.totalorder %s659_s7, %s653_s4 }
  0xea   : > { %v329_v46 = vld [vmem:[#allocation2] sm:$0x1]  ;;  %v331_v48 = vld [vmem:[#allocation2 + $0x1] sm:$0x1] }
  0xeb   : > { %v332_v51 = vadd.f32 %v331_v48, %v329_v46  ;;  %p656_p3 = pneg %p655_p13  ;;  %p662_p10 = por %p661_p4, %p660_p6 }
  0xec   : > { %v330_v47 = vld [vmem:[#allocation3] sm:$0x1]  ;;  %v333_v49 = vld [vmem:[#allocation3 + $0x1] sm:$0x1] }
  0xed   : > { %v334_v50 = vadd.f32 %v333_v49, %v330_v47  ;;  %p663_p12 = pnand %p662_p10, %p656_p3 }
  0xef   : > { %v339_v52 = vrot.slane %v334_v50, %v338_v45 }
  0xf1   : > { %v342_v53 = vsel %vm341_vm2, %v332_v51, %v339_v52 }
  0xf2   : > { %343 = vst [vmem:[%s229_s22] sm:$0x3] %v342_v53 }
  0xf3   : > { %666 = shalt.err (!%p663_p12)
}
  0xf4   : > { %s667_s5 = scalar_lea.hbm %s951_s28, 32  ;;  %s671_s18 = scalar_lea.hbm %s1003_s3, 64 }
  0xf5   : > { %p668_p1 = scmp.ne.s32.totalorder %s951_s28, %s667_s5  ;;  %p672_p8 = scmp.lt.u32.totalorder %s951_s28, %s1003_s3 }
  0xf6   : > { %p673_p11 = scmp.lt.u32.totalorder %s671_s18, %s667_s5  ;;  %p675_p7 = scmp.lt.u32.totalorder %s667_s5, %s951_s28 }
  0xf7   : > { %p669_p2 = pnand %p668_p1, %p1014_p9 }
  0xf8   : > { %p674_p0 = por %p673_p11, %p672_p8 }
  0xf9   : > { %p670_p5 = pneg %p669_p2 }
  0xfa   : > { %p676_p13 = por %p675_p7, %p674_p0 }
  0xfc   : > { %p677_p3 = pnand %p676_p13, %p670_p5 }
  0xfe   : > { %680 = shalt.err (!%p677_p3)
}
  0xff   : > { %526 = dma.vmem_to_hbm [thread:$0]  (%p1014_p9), %s953_s29, 32, %s951_s28, %s350_s30  }
 0x100 PF: > { %s393_s10 = sand.u32 1, %s719_s12   ;;  %p1015_p6 = scmp.ne.s32.totalorder %s1008_s27, 0 }
 0x101   : > { %p1016_p4 = scmp.ge.s32.totalorder %s739_s17, 2  ;;  %s394_s21 = scalar_lea.sflag [#allocation6], %s393_s10 }
 0x103   : > { %p534_p10 = pnand %p1016_p4, %p1015_p6 }
 0x105   : > { %710 = dma.done.wait (!%p534_p10), %s394_s21, 32  }
 0x106   : > { %712 = vsyncadd (!%p534_p10), %s394_s21, 4294967264  ;;  %s403_s22 = scalar_lea.sflag [#allocation9], %s393_s10 }
 0x107   : > { %714 = dma.done.wait (!%p534_p10), %s403_s22, 32  }
 0x108   : > { %716 = vsyncadd (!%p534_p10), %s403_s22, 4294967264  ;;  %s23_s17 = sadd.s32 1, %s739_s17   ;;  %s1017_s12 = smov %s723_s13 }
 0x109   : > { %p20_p12 = scmp.ge.s32.totalorder %s23_s17, 4   ;;  %s1018_s13 = smov %s727_s14 }
 0x10a   : > { %s1019_s14 = smov %s824_s26  ;;  %s1020_s15 = smov %s735_s16 }
 0x10b   : > { %s1021_s16 = smov %s1023_s20  ;;  %22 = sbr.rel (!%p20_p12) target bundleno = 8 (0x8), region = 98 }
 0x112   :  { %408 = vsyncpa [#allocation5], 1 }
 0x113   :  { %410 = vsyncpa [#allocation5 + $0x1], 1 }
 0x114   :  { %411 = vsyncpa [#allocation6], 1 }
 0x115   :  { %413 = vsyncpa [#allocation6 + $0x1], 1 }
 0x116   :  { %414 = vsyncpa [#allocation9], 1 }
 0x117   :  { %416 = vsyncpa [#allocation9 + $0x1], 1 }

</bundles_post_ra>
